<compile_context>
chip_gen: v6e
topology: v6e:2x2x1
jax: 0.10.0
libtpu: 0.0.40
codegen_flags: <defaults>
</compile_context>

<pallas_src>
import functools

import jax
import jax.numpy as jnp
from jax.experimental import pallas as pl
from jax.experimental.pallas import tpu as pltpu


def _ce_kernel(logits_ref, label_ref, out_ref,
               m_ref, l_ref, s_ref, ysum_ref, *,
               n_rows, n_classes, tm, rows_per_split, inv_n,
               n_class_tiles, mask_rows, mask_cols, labels_sum_to_one):
    split = pl.program_id(0)   # TensorCore split (parallel)
    i = pl.program_id(1)       # row tile within split (arbitrary)
    k = pl.program_id(2)       # class tile (arbitrary, innermost)

    # Zero this split's resident accumulator block at the start of its work.
    @pl.when((i == 0) & (k == 0))
    def _init_out():
        out_ref[...] = jnp.zeros_like(out_ref)

    x = logits_ref[...].astype(jnp.float32)          # (tm, tc)
    y = label_ref[...].astype(jnp.float32)           # (tm, tc)
    tc = x.shape[-1]

    if mask_cols:
        # Last class tile is ragged: neutralize out-of-bounds columns.
        col_ids = k * tc + jax.lax.broadcasted_iota(jnp.int32, (1, tc), 1)
        col_ok = col_ids < n_classes
        x_lse = jnp.where(col_ok, x, -jnp.inf)       # exp() path: -inf -> 0
        x_dot = jnp.where(col_ok, x, 0.0)            # sum(y*x) path
        y = jnp.where(col_ok, y, 0.0)
    else:
        x_lse = x
        x_dot = x

    m_loc = jnp.max(x_lse, axis=-1, keepdims=True)            # (tm, 1)
    s_loc = jnp.sum(y * x_dot, axis=-1, keepdims=True)        # (tm, 1)
    ysum_loc = None if labels_sum_to_one else jnp.sum(y, axis=-1, keepdims=True)

    def _accumulate(per_row):
        if mask_rows:
            # Ragged N / uneven split: mask rows past the true N.  Must mask
            # the per-row loss itself (not rely on zero labels) so garbage
            # logits can never contribute Inf/NaN.
            row_ids = (split * rows_per_split + i) * tm + \
                jax.lax.broadcasted_iota(jnp.int32, (tm, 1), 0)
            per_row = jnp.where(row_ids < n_rows, per_row, 0.0)
        # Scale by 1/N per tile (better f32 accumulation for large N).
        out_ref[...] = out_ref[...] + jnp.sum(per_row) * inv_n

    if n_class_tiles == 1:
        # Whole class axis in one tile: plain numerically-stable LSE.
        lse = m_loc + jnp.log(jnp.sum(jnp.exp(x_lse - m_loc), axis=-1,
                                      keepdims=True))
        if labels_sum_to_one:
            per_row = lse - s_loc
        else:
            per_row = ysum_loc * lse - s_loc
        _accumulate(per_row)
    else:
        # Online (flash-style) LSE across class tiles.
        @pl.when(k == 0)
        def _init_rows():
            m_ref[...] = jnp.full(m_ref.shape, -jnp.inf, dtype=jnp.float32)
            l_ref[...] = jnp.zeros_like(l_ref)
            s_ref[...] = jnp.zeros_like(s_ref)
            if not labels_sum_to_one:
                ysum_ref[...] = jnp.zeros_like(ysum_ref)

        m_prev = m_ref[...]
        m_new = jnp.maximum(m_prev, m_loc)
        alpha = jnp.exp(m_prev - m_new)
        l_ref[...] = alpha * l_ref[...] + jnp.sum(jnp.exp(x_lse - m_new),
                                                  axis=-1, keepdims=True)
        m_ref[...] = m_new
        s_ref[...] = s_ref[...] + s_loc
        if not labels_sum_to_one:
            ysum_ref[...] = ysum_ref[...] + ysum_loc

        @pl.when(k == n_class_tiles - 1)
        def _finish_row_tile():
            lse = m_ref[...] + jnp.log(l_ref[...])
            if labels_sum_to_one:
                per_row = lse - s_ref[...]
            else:
                per_row = ysum_ref[...] * lse - s_ref[...]
            _accumulate(per_row)


def _tpu_vmem_capacity_bytes():
    try:
        cap = getattr(pltpu.get_tpu_info(), "vmem_capacity_bytes", None)
        if cap:
            return int(cap)
    except Exception:
        pass
    return 128 << 20          # v5e / v6e default


def _tpu_num_tensorcores():
    try:
        info = pltpu.get_tpu_info()
        for name in ("num_cores", "core_count", "num_tensorcores",
                     "tensorcores_per_chip", "num_tensor_cores"):
            v = getattr(info, name, None)
            if v:
                return max(1, min(8, int(v)))
    except Exception:
        pass
    return 1


def softmax_with_cross_entropy(logits, label, *, tm=None, tc=None,
                               n_splits=None, labels_sum_to_one=False,
                               min_pallas_classes=128):
    """Pallas equivalent of the PyTorch softmax_with_cross_entropy.forward.

    logits, label: (N, C), class axis last (PyTorch dim=1). Returns scalar f32.
    Pass bf16 logits/label straight from the producer to halve HBM traffic
    (the kernel is HBM-bandwidth bound); math is f32 inside the kernel.
    Set labels_sum_to_one=True when labels are row-normalized (GRANModel's
    soft labels are) to skip the sum(label) reduction.
    """
    assert logits.ndim == 2 and logits.shape == label.shape
    n, c = logits.shape

    # Tiny class counts: most vreg lanes are empty and per-step overhead
    # dominates; XLA's fused log_softmax is at least as good.
    if c < min_pallas_classes:
        logprobs = jax.nn.log_softmax(logits.astype(jnp.float32), axis=1)
        return -jnp.mean(jnp.sum(label.astype(jnp.float32) * logprobs, axis=1))

    in_itemsize = (jnp.dtype(logits.dtype).itemsize
                   + jnp.dtype(label.dtype).itemsize)

    # ----- class tile -------------------------------------------------------
    max_tc = 2048
    if tc is None:
        tc = c if c <= max_tc else max_tc
    tc = int(tc)
    if tc >= c:
        tc = c                                    # one tile == full class axis
    else:
        tc = max(128, (tc // 128) * 128)          # lane-aligned class tiles
    n_class_tiles = pl.cdiv(c, tc)
    mask_cols = (n_class_tiles * tc != c)

    # ----- generation-aware row tile (VMEM: 64 MiB/TC on v7x, 128 on v5e/v6e)
    vmem_cap = _tpu_vmem_capacity_bytes()
    budget = min(int(0.75 * vmem_cap), 100 << 20)
    if tm is None:
        per_row_bytes = tc * (2 * in_itemsize + 5 * 4)   # dbl-buf inputs + f32 temps
        tm = (budget // max(per_row_bytes, 1)) // 8 * 8
        tm = max(8, min(1024, tm))
    tm = max(8, (int(tm) // 8) * 8)
    tm = min(tm, (n + 7) // 8 * 8)

    n_row_tiles = pl.cdiv(n, tm)

    # ----- TensorCore split (v7x has 2 TCs; size-1 elsewhere) ---------------
    if n_splits is None:
        n_splits = _tpu_num_tensorcores()
    n_splits = max(1, min(int(n_splits), n_row_tiles))
    rows_per_split = pl.cdiv(n_row_tiles, n_splits)
    mask_rows = (n_splits * rows_per_split * tm != n)

    last_row_tile = n_row_tiles - 1

    def in_map(s, i, k):
        # Clamp so overhang iterations of an uneven split read a valid tile;
        # their rows are masked to zero in-kernel.
        return (jnp.minimum(s * rows_per_split + i, last_row_tile), k)

    kernel = functools.partial(
        _ce_kernel,
        n_rows=n, n_classes=c, tm=tm, rows_per_split=rows_per_split,
        inv_n=1.0 / float(n), n_class_tiles=n_class_tiles,
        mask_rows=mask_rows, mask_cols=mask_cols,
        labels_sum_to_one=bool(labels_sum_to_one))

    # 2 pipeline buffers per input + f32 temporaries + lane-padded row scratch.
    tile_bytes = (2 * tm * tc * in_itemsize
                  + 5 * tm * tc * 4
                  + 4 * tm * 128 * 4)
    vmem_limit = int(min(0.9 * vmem_cap, max(32 << 20, tile_bytes + (8 << 20))))

    cost = pl.CostEstimate(
        flops=6 * n * c,
        transcendentals=n * c + n,
        bytes_accessed=n * c * in_itemsize + 8 * n_splits * 4,
    )

    out = pl.pallas_call(
        kernel,
        out_shape=jax.ShapeDtypeStruct((8 * n_splits, 1), jnp.float32),
        grid_spec=pltpu.PrefetchScalarGridSpec(
            num_scalar_prefetch=0,
            grid=(n_splits, rows_per_split, n_class_tiles),
            in_specs=[
                pl.BlockSpec((tm, tc), in_map),
                pl.BlockSpec((tm, tc), in_map),
            ],
            # One (8,1) accumulator slot per TensorCore split, resident across
            # the (row, class) reduction axes.
            out_specs=pl.BlockSpec((8, 1), lambda s, i, k: (s, 0)),
            scratch_shapes=[
                pltpu.VMEM((tm, 1), jnp.float32),   # running max        m
                pltpu.VMEM((tm, 1), jnp.float32),   # running sum(exp)   l
                pltpu.VMEM((tm, 1), jnp.float32),   # running sum(y*x)   s
                pltpu.VMEM((tm, 1), jnp.float32),   # running sum(y)
            ],
        ),
        compiler_params=pltpu.CompilerParams(
            dimension_semantics=("parallel", "arbitrary", "arbitrary"),
            vmem_limit_bytes=vmem_limit,
        ),
        cost_estimate=cost,
    )(logits, label)

    # Every row of a split's (8,1) block holds that split's partial mean.
    return jnp.sum(out.reshape(n_splits, 8)[:, 0])


def _reference(logits, label):
    logprobs = jax.nn.log_softmax(logits.astype(jnp.float32), axis=1)
    return jnp.mean(-jnp.sum(label.astype(jnp.float32) * logprobs, axis=1))


if __name__ == "__main__":
    key = jax.random.PRNGKey(0)
    k1, k2, k3, k4 = jax.random.split(key, 4)

    # 1) Primary Pallas path: vocab-style logits, single class tile.
    N1, C1 = 16, 512
    logits1 = jax.random.normal(k1, (N1, C1), dtype=jnp.float32)
    label1 = jax.nn.softmax(jax.random.normal(k2, (N1, C1), jnp.float32), axis=1)
    got1 = jax.block_until_ready(softmax_with_cross_entropy(logits1, label1))
    ref1 = jax.block_until_ready(_reference(logits1, label1))
    assert jnp.allclose(got1, ref1, rtol=1e-4, atol=1e-4), (got1, ref1)

    # 1b) Labels known row-normalized -> skips the sum(label) reduction.
    got1b = jax.block_until_ready(
        softmax_with_cross_entropy(logits1, label1, labels_sum_to_one=True))
    assert jnp.allclose(got1b, ref1, rtol=1e-4, atol=1e-4), (got1b, ref1)

    # 2) Ragged N and ragged C (multi class tiles -> online LSE), bf16 inputs,
    #    explicit 2-way TensorCore split (runs serially on 1-TC chips).
    N2, C2 = 50, 400
    logits2 = jax.random.normal(k3, (N2, C2), jnp.float32).astype(jnp.bfloat16)
    label2 = jax.nn.softmax(
        jax.random.normal(k4, (N2, C2), jnp.float32), axis=1).astype(jnp.bfloat16)
    got2 = jax.block_until_ready(
        softmax_with_cross_entropy(logits2, label2, tm=16, tc=128, n_splits=2))
    ref2 = jax.block_until_ready(_reference(logits2, label2))
    assert jnp.allclose(got2, ref2, rtol=1e-4, atol=1e-4), (got2, ref2)

    # 3) Tiny class count -> XLA fallback dispatch.
    N3, C3 = 8, 32
    logits3 = jax.random.normal(k1, (N3, C3), dtype=jnp.float32)
    label3 = jax.nn.softmax(jax.random.normal(k2, (N3, C3), jnp.float32), axis=1)
    got3 = jax.block_until_ready(softmax_with_cross_entropy(logits3, label3))
    ref3 = jax.block_until_ready(_reference(logits3, label3))
    assert jnp.allclose(got3, ref3, rtol=1e-5, atol=1e-5), (got3, ref3)

    print("KERNEL_OK")
</pallas_src>

<mosaic_0001>
module attributes {stable_mosaic.version = 11 : i64} {
  func.func @_ce_kernel(%arg0: i32, %arg1: i32, %arg2: i32, %arg3: memref<16x512xf32, #tpu.memory_space<vmem>>, %arg4: memref<16x512xf32, #tpu.memory_space<vmem>>, %arg5: memref<8x1xf32, #tpu.memory_space<vmem>>, %arg6: memref<16x1xf32, #tpu.memory_space<vmem>>, %arg7: memref<16x1xf32, #tpu.memory_space<vmem>>, %arg8: memref<16x1xf32, #tpu.memory_space<vmem>>, %arg9: memref<16x1xf32, #tpu.memory_space<vmem>>) attributes {dimension_semantics = [#tpu.dimension_semantics<parallel>, #tpu.dimension_semantics<arbitrary>, #tpu.dimension_semantics<arbitrary>], iteration_bounds = array<i64: 1, 1, 1>, scalar_prefetch = 0 : i64, scratch_operands = 4 : i64, tpu.core_type = #tpu.core_type<tc>, window_params = [{transform_indices = @transform_0, window_bounds = array<i64: 16, 512>}, {transform_indices = @transform_1, window_bounds = array<i64: 16, 512>}, {transform_indices = @transform_2, window_bounds = array<i64: 8, 1>}]} {
    %c0_i32 = arith.constant 0 : i32
    %0 = arith.cmpi eq, %arg1, %c0_i32 : i32
    %c0_i32_0 = arith.constant 0 : i32
    %1 = arith.cmpi eq, %arg2, %c0_i32_0 : i32
    %2 = arith.andi %0, %1 : i1
    %3 = arith.extui %2 : i1 to i32
    %c0_i32_1 = arith.constant 0 : i32
    %4 = arith.cmpi ne, %3, %c0_i32_1 : i32
    scf.if %4 {
      %cst_14 = arith.constant 0.000000e+00 : f32
      %32 = vector.broadcast %cst_14 : f32 to vector<8x1xf32>
      %c0_15 = arith.constant 0 : index
      %c0_16 = arith.constant 0 : index
      %33 = vector.load %arg5[%c0_15, %c0_16] : memref<8x1xf32, #tpu.memory_space<vmem>>, vector<8x1xf32>
      tpu.vector_store %arg5[%c0_15, %c0_16], %32 {strides = array<i32>} : memref<8x1xf32, #tpu.memory_space<vmem>>, vector<8x1xf32>,
    } else {
    }
    %c0 = arith.constant 0 : index
    %c0_2 = arith.constant 0 : index
    %5 = vector.load %arg3[%c0, %c0_2] : memref<16x512xf32, #tpu.memory_space<vmem>>, vector<16x512xf32>
    %c0_3 = arith.constant 0 : index
    %c0_4 = arith.constant 0 : index
    %6 = vector.load %arg4[%c0_3, %c0_4] : memref<16x512xf32, #tpu.memory_space<vmem>>, vector<16x512xf32>
    %cst = arith.constant dense<0xFF800000> : vector<16xf32>
    %7 = vector.multi_reduction <maximumf>, %5, %cst [1] : vector<16x512xf32> to vector<16xf32>
    %8 = vector.shape_cast %7 : vector<16xf32> to vector<16x1xf32>
    %9 = arith.mulf %6, %5 : vector<16x512xf32>
    %cst_5 = arith.constant dense<0.000000e+00> : vector<16xf32>
    %10 = vector.multi_reduction <add>, %9, %cst_5 [1] : vector<16x512xf32> to vector<16xf32>
    %11 = vector.shape_cast %10 : vector<16xf32> to vector<16x1xf32>
    %cst_6 = arith.constant dense<0.000000e+00> : vector<16xf32>
    %12 = vector.multi_reduction <add>, %6, %cst_6 [1] : vector<16x512xf32> to vector<16xf32>
    %13 = vector.shape_cast %12 : vector<16xf32> to vector<16x1xf32>
    %14 = vector.broadcast %8 : vector<16x1xf32> to vector<16x512xf32>
    %15 = arith.subf %5, %14 : vector<16x512xf32>
    %16 = math.exp %15 : vector<16x512xf32>
    %cst_7 = arith.constant dense<0.000000e+00> : vector<16xf32>
    %17 = vector.multi_reduction <add>, %16, %cst_7 [1] : vector<16x512xf32> to vector<16xf32>
    %18 = vector.shape_cast %17 : vector<16xf32> to vector<16x1xf32>
    %19 = math.log %18 : vector<16x1xf32>
    %20 = arith.addf %8, %19 : vector<16x1xf32>
    %21 = arith.mulf %13, %20 : vector<16x1xf32>
    %22 = arith.subf %21, %11 : vector<16x1xf32>
    %c0_8 = arith.constant 0 : index
    %c0_9 = arith.constant 0 : index
    %23 = vector.load %arg5[%c0_8, %c0_9] : memref<8x1xf32, #tpu.memory_space<vmem>>, vector<8x1xf32>
    %24 = vector.shape_cast %22 : vector<16x1xf32> to vector<1x16x1xf32>
    %cst_10 = arith.constant dense<0.000000e+00> : vector<1xf32>
    %25 = vector.multi_reduction <add>, %24, %cst_10 [1, 2] : vector<1x16x1xf32> to vector<1xf32>
    %26 = vector.shape_cast %25 : vector<1xf32> to vector<1x1x1xf32>
    %27 = vector.extract %26[0, 0, 0] : f32 from vector<1x1x1xf32>
    %cst_11 = arith.constant 6.250000e-02 : f32
    %28 = arith.mulf %27, %cst_11 : f32
    %29 = vector.broadcast %28 : f32 to vector<8x1xf32>
    %30 = arith.addf %23, %29 : vector<8x1xf32>
    %c0_12 = arith.constant 0 : index
    %c0_13 = arith.constant 0 : index
    %31 = vector.load %arg5[%c0_12, %c0_13] : memref<8x1xf32, #tpu.memory_space<vmem>>, vector<8x1xf32>
    tpu.vector_store %arg5[%c0_12, %c0_13], %30 {strides = array<i32>} : memref<8x1xf32, #tpu.memory_space<vmem>>, vector<8x1xf32>,
    return
  }
  func.func @transform_0(%arg0: i32, %arg1: i32, %arg2: i32) -> (i32, i32) {
    %c1_i32 = arith.constant 1 : i32
    %0 = arith.muli %arg0, %c1_i32 : i32
    %1 = arith.addi %0, %arg1 : i32
    %c0_i32 = arith.constant 0 : i32
    %2 = arith.minsi %1, %c0_i32 : i32
    %c0_i32_0 = arith.constant 0 : i32
    return %2, %arg2 : i32, i32
  }
  func.func @transform_1(%arg0: i32, %arg1: i32, %arg2: i32) -> (i32, i32) {
    %c1_i32 = arith.constant 1 : i32
    %0 = arith.muli %arg0, %c1_i32 : i32
    %1 = arith.addi %0, %arg1 : i32
    %c0_i32 = arith.constant 0 : i32
    %2 = arith.minsi %1, %c0_i32 : i32
    %c0_i32_0 = arith.constant 0 : i32
    return %2, %arg2 : i32, i32
  }
  func.func @transform_2(%arg0: i32, %arg1: i32, %arg2: i32) -> (i32, i32) {
    %c0_i32 = arith.constant 0 : i32
    %c0_i32_0 = arith.constant 0 : i32
    return %arg0, %c0_i32 : i32, i32
  }
}

</mosaic_0001>

<bundles_post_ra>
// kernel: tpu_custom_call.1
= control target key start
LH: loop header
LB: loop body
LE: loop exit
PB: predicated region body
PF: predicated region fallthrough
CT: control target
= control target key end

     0   :  { %7 = vsyncpa [#allocation7], 0  ;;  %s329_s0 = inlined_call_operand.hbm [shape: f32[16,512], index: 0, kind: input, shape index: {}]   ;;  %s330_s1 = inlined_call_operand.hbm [shape: f32[16,512], index: 1, kind: input, shape index: {}]   ;;  %s331_s2 = inlined_call_operand.vmem [shape: f32[8,1], index: 2, kind: output, shape index: {}]  }
   0x1   :  { %8 = vsyncpa [#allocation9], 0  ;;  %s266_s9 = smov [#allocation6]  }
   0x2   :  { %s21_s10 = sshll.u32 %s266_s9, 4  ;;  %s22_s10 = int_to_ptr.vmem [resolvable:$true] %s21_s10 }
   0x3   :  { %s230_s11 = scalar_lea.vmem %s22_s10, 1024  ;;  %p235_p1 = scmp.lt.s32.totalorder %s22_s10, %s22_s10 }
   0x4   :  { %p231_p0 = scmp.ne.s32.totalorder %s22_s10, %s230_s11  ;;  %p236_p2 = scmp.lt.s32.totalorder %s230_s11, %s230_s11 }
   0x6   :  { %p237_p3 = por %p236_p2, %p235_p1 }
   0x8   :  { %p238_p4 = pnand %p237_p3, %p231_p0 }
   0xa   :  { %241 = shalt.err (!%p238_p4)
}
   0xb   :  { %s267_s12 = smov 512   ;;  %s268_s13 = smov 32  }
   0xc   :  { %27 = dma.hbm_to_vmem [thread:$0]  %s329_s0, 1024, %s22_s10, [#allocation7], %s267_s12, %s267_s12, %s268_s13  }
   0xd   :  { %s269_s16 = smov [#allocation8]  }
   0xe   :  { %s40_s17 = sshll.u32 %s269_s16, 4  ;;  %s41_s17 = int_to_ptr.vmem [resolvable:$true] %s40_s17 }
   0xf   :  { %s250_s18 = scalar_lea.vmem %s41_s17, 1024  ;;  %p255_p6 = scmp.lt.s32.totalorder %s41_s17, %s41_s17 }
  0x10   :  { %p251_p5 = scmp.ne.s32.totalorder %s41_s17, %s250_s18  ;;  %p256_p7 = scmp.lt.s32.totalorder %s250_s18, %s250_s18 }
  0x12   :  { %p257_p8 = por %p256_p7, %p255_p6 }
  0x14   :  { %p258_p9 = pnand %p257_p8, %p251_p5 }
  0x16   :  { %261 = shalt.err (!%p258_p9)
}
  0x17   :  { %46 = dma.hbm_to_vmem [thread:$0]  %s330_s1, 1024, %s41_s17, [#allocation9], %s267_s12, %s267_s12, %s268_s13  }
  0x18   :  { %262 = dma.done.wait [#allocation7], 1024  }
  0x19   :  { %263 = vsyncadd [#allocation7], 4294966272 }
  0x1a   :  { %264 = dma.done.wait [#allocation9], 1024  }
  0x1b   :  { %265 = vsyncadd [#allocation9], 4294966272  ;;  %v69_v0 = vld [vmem:[#allocation6] sm:$0xff]  ;;  %v70_v1 = vld [vmem:[#allocation6 + $0x8] sm:$0xff]  ;;  %vm67_vm0 = vcmask 7168  }
  0x1c   :  { %v71_v2 = vld [vmem:[#allocation6 + $0x10] sm:$0xff]  ;;  %v72_v3 = vld [vmem:[#allocation6 + $0x18] sm:$0xff]  ;;  %v73_v6 = vld [vmem:[#allocation6 + $0x20] sm:$0xff] }
  0x1d   :  { %v85_v4 = vmax.f32 %v69_v0, %v71_v2  ;;  %v86_v5 = vmax.f32 %v70_v1, %v72_v3  ;;  %v74_v7 = vld [vmem:[#allocation6 + $0x28] sm:$0xff]  ;;  %v292_v8 = vld [vmem:[#allocation6 + $0x30] sm:$0xff]  ;;  %v294_v9 = vld [vmem:[#allocation6 + $0x38] sm:$0xff] }
  0x1e   :  { %v90_v10 = vmax.f32 %v73_v6, %v292_v8  ;;  %v91_v12 = vmax.f32 %v74_v7, %v294_v9  ;;  %v77_v14 = vld [vmem:[#allocation8] sm:$0xff]  ;;  %v78_v15 = vld [vmem:[#allocation8 + $0x8] sm:$0xff]  ;;  %v79_v18 = vld [vmem:[#allocation8 + $0x10] sm:$0xff] }
  0x1f   :  { %v87_v11 = vmax.f32 %v85_v4, %v86_v5  ;;  %v95_v16 = vmul.f32 %v77_v14, %v69_v0  ;;  %v96_v17 = vmul.f32 %v78_v15, %v70_v1  ;;  %v113_v19 = vadd.f32 %v78_v15, %v77_v14  ;;  %v80_v21 = vld [vmem:[#allocation8 + $0x18] sm:$0xff]  ;;  %v81_v48 = vld [vmem:[#allocation8 + $0x20] sm:$0xff]  ;;  %v82_v49 = vld [vmem:[#allocation8 + $0x28] sm:$0xff] }
  0x20   :  { %v92_v13 = vmax.f32 %v90_v10, %v91_v12  ;;  %v97_v22 = vmul.f32 %v79_v18, %v71_v2  ;;  %v98_v24 = vmul.f32 %v80_v21, %v72_v3  ;;  %v118_v55 = vadd.f32 %v82_v49, %v81_v48  ;;  %v83_v59 = vld [vmem:[#allocation8 + $0x30] sm:$0xff]  ;;  %v84_v4 = vld [vmem:[#allocation8 + $0x38] sm:$0xff] }
  0x21   :  { %88 = vmax.xlane.f32.xlu0 %v87_v11  ;;  %v103_v20 = vadd.f32 %v96_v17, %v95_v16  ;;  %v114_v23 = vadd.f32 %v113_v19, %v79_v18  ;;  %v99_v56 = vmul.f32 %v81_v48, %v73_v6  ;;  %v100_v57 = vmul.f32 %v82_v49, %v74_v7 }
  0x22   :  { %v102_v11 = vmul.f32 %v84_v4, %v294_v9  ;;  %v270_v12 = vmov 0.0  }
  0x23   :  { %v104_v25 = vadd.f32 %v103_v20, %v97_v22  ;;  %v115_v26 = vadd.f32 %v114_v23, %v80_v21  ;;  %68 = vst.msk [vmem:[%s331_s2] sm:$0xff] %vm67_vm0, %v270_v12 }
  0x25   :  { %93 = vmax.xlane.f32.xlu0 %v92_v13  ;;  %v105_v27 = vadd.f32 %v104_v25, %v98_v24 }
  0x29   :  { %116 = vadd.xlane.f32.xlu0 %v115_v26 }
  0x2d   :  { %106 = vadd.xlane.f32.xlu0 %v105_v27 }
  0xaa   :  { %v298_v28 = vpop.xlane.xlu0 %88 }
  0xab   :  { %v123_v29 = vsub.f32 %v69_v0, %v298_v28  ;;  %v124_v30 = vsub.f32 %v70_v1, %v298_v28  ;;  %v125_v31 = vsub.f32 %v71_v2, %v298_v28  ;;  %v126_v32 = vsub.f32 %v72_v3, %v298_v28 }
  0xac   :  { %v119_v0 = vadd.f32 %v118_v55, %v83_v59  ;;  %v101_v1 = vmul.f32 %v83_v59, %v292_v8  ;;  %v108_v2 = vadd.f32 %v100_v57, %v99_v56 }
  0xad   :  { %v131_v33 = vmul.f32 1.442695, %v123_v29  ;;  %v133_v34 = vmul.f32 1.442695, %v124_v30  ;;  %v135_v35 = vmul.f32 1.442695, %v125_v31 }
  0xae   :  { %v137_v36 = vmul.f32 1.442695, %v126_v32  ;;  %v304_v37 = vpop.xlane.xlu0 %93  ;;  %v120_v10 = vadd.f32 %v119_v0, %v84_v4 }
  0xaf   :  { %202 = vpow2.f32 %v131_v33  ;;  %v127_v38 = vsub.f32 %v73_v6, %v304_v37  ;;  %v128_v39 = vsub.f32 %v74_v7, %v304_v37  ;;  %v129_v40 = vsub.f32 %v292_v8, %v304_v37 }
  0xb0   :  { %204 = vpow2.f32 %v133_v34  ;;  %v130_v41 = vsub.f32 %v294_v9, %v304_v37  ;;  %v109_v6 = vadd.f32 %v108_v2, %v101_v1 }
  0xb1   :  { %206 = vpow2.f32 %v135_v35  ;;  %v139_v42 = vmul.f32 1.442695, %v127_v38  ;;  %v141_v43 = vmul.f32 1.442695, %v128_v39  ;;  %v143_v44 = vmul.f32 1.442695, %v129_v40 }
  0xb2   :  { %208 = vpow2.f32 %v137_v36  ;;  %v145_v45 = vmul.f32 1.442695, %v130_v41  ;;  %v110_v7 = vadd.f32 %v109_v6, %v102_v11  ;;  %v117_v15 = vpop.xlane.xlu0 %116 }
  0xb3   :  { %210 = vpow2.f32 %v139_v42 }
  0xb4   :  { %212 = vpow2.f32 %v141_v43 }
  0xb5   :  { %214 = vpow2.f32 %v143_v44 }
  0xb6   :  { %216 = vpow2.f32 %v145_v45  ;;  %v107_v21 = vpop.xlane.xlu0 %106 }
  0xbc   :  { %v203_v46 = vpop.eup %202 }
  0xbd   :  { %v205_v47 = vpop.eup %204 }
  0xbe   :  { %v207_v50 = vpop.eup %206  ;;  %v147_v51 = vadd.f32 %v205_v47, %v203_v46 }
  0xbf   :  { %v209_v52 = vpop.eup %208 }
  0xc0   :  { %v211_v53 = vpop.eup %210  ;;  %v148_v54 = vadd.f32 %v207_v50, %v147_v51 }
  0xc1   :  { %v213_v58 = vpop.eup %212 }
  0xc2   :  { %v149_v60 = vadd.f32 %v209_v52, %v148_v54  ;;  %v152_v61 = vadd.f32 %v213_v58, %v211_v53  ;;  %v215_v62 = vpop.eup %214 }
  0xc3   :  { %v217_v3 = vpop.eup %216 }
  0xc4   :  { %150 = vadd.xlane.f32.xlu1 %v149_v60  ;;  %v153_v63 = vadd.f32 %v215_v62, %v152_v61 }
  0xc6   :  { %v154_v5 = vadd.f32 %v217_v3, %v153_v63 }
  0xc8   :  { %155 = vadd.xlane.f32.xlu1 %v154_v5 }
  0xcc   :  { %121 = vadd.xlane.f32.xlu1 %v120_v10 }
  0xd0   :  { %111 = vadd.xlane.f32.xlu1 %v110_v7 }
 0x14d   :  { %v151_v8 = vpop.xlane.xlu1 %150 }
 0x14e   :  { %218 = vlog2.f32 %v151_v8 }
 0x151   :  { %v156_v13 = vpop.xlane.xlu1 %155 }
 0x152   :  { %220 = vlog2.f32 %v156_v13 }
 0x155   :  { %v122_v17 = vpop.xlane.xlu1 %121 }
 0x159   :  { %v112_v23 = vpop.xlane.xlu1 %111 }
 0x15b   :  { %v219_v14 = vpop.eup %218 }
 0x15c   :  { %v158_v16 = vmul.f32 0.6931472, %v219_v14 }
 0x15e   :  { %v161_v9 = vadd.f32 %v158_v16, %v298_v28 }
 0x15f   :  { %v221_v18 = vpop.eup %220 }
 0x160   :  { %v160_v19 = vmul.f32 0.6931472, %v221_v18  ;;  %v163_v20 = vmul.f32 %v161_v9, %v117_v15 }
 0x162   :  { %v162_v22 = vadd.f32 %v160_v19, %v304_v37  ;;  %v165_v25 = vsub.f32 %v163_v20, %v107_v21  ;;  %v167_v37 = vld [vmem:[%s331_s2] sm:$0xff] }
 0x164   :  { %v164_v24 = vmul.f32 %v162_v22, %v122_v17  ;;  %v169_v27 = vsel %vm67_vm0, %v165_v25, 0.0 }
 0x166   :  { %v166_v26 = vsub.f32 %v164_v24, %v112_v23 }
 0x168   :  { %v170_v29 = vsel %vm67_vm0, %v166_v26, 0.0 }
 0x169   :  { %v171_v30 = vadd.f32 %v170_v29, %v169_v27 }
 0x16b   :  { %172 = vadd.xlane.f32.xlu0 %v171_v30 }
 0x1f4   :  { %v173_v31 = vpop.xlane.xlu0 %172 }
 0x1f5   :  { %v174_v32 = vrot.slane %v173_v31, 4 }
 0x1f7   :  { %v175_v33 = vadd.f32 %v174_v32, %v173_v31 }
 0x1f9   :  { %v176_v28 = vrot.slane %v175_v33, 2 }
 0x1fb   :  { %v177_v34 = vadd.f32 %v176_v28, %v175_v33 }
 0x1fd   :  { %v178_v35 = vrot.slane %v177_v34, 1 }
 0x1ff   :  { %v179_v36 = vadd.f32 %v178_v35, %v177_v34 }
 0x201   :  { %195 = vpush %v179_v36 }
 0x232   :  { %s196_s21 = spop %195 }
 0x233   :  { %s181_s24 = smul.f32 0.0625, %s196_s21 }
 0x235   :  { %v182_v38 = vstv %s181_s24 }
 0x236   :  { %v183_v39 = vadd.f32 %v182_v38, %v167_v37 }
 0x238   :  { %184 = vst.msk [vmem:[%s331_s2] sm:$0xff] %vm67_vm0, %v183_v39 }
 0x239   :  { %189 = vsyncpa [#allocation7], 1 }
 0x23a   :  { %190 = vsyncpa [#allocation9], 1 }

</bundles_post_ra>
